<compile_context>
chip_gen: v7x
topology: tpu7x:2x2x1
jax: 0.10.0
libtpu: 0.0.40
codegen_flags: <defaults>
</compile_context>

<pallas_src>
import functools

import jax
import jax.numpy as jnp
from jax import lax
from jax.experimental import pallas as pl
from jax.experimental.pallas import tpu as pltpu


def _kl_ce_kernel(student_ref, teacher_ref, labels_ref,
                  kl_ref, ce_ref, cnt_ref,
                  *, inv_temp, ignore_idx):
    j = pl.program_id(1)          # inner (row-tile) axis within this chunk

    @pl.when(j == 0)
    def _():
        kl_ref[...] = jnp.zeros_like(kl_ref)
        ce_ref[...] = jnp.zeros_like(ce_ref)
        cnt_ref[...] = jnp.zeros_like(cnt_ref)

    s = student_ref[...].astype(jnp.float32)      # (R, V)
    t = teacher_ref[...].astype(jnp.float32)      # (R, V)
    labels = labels_ref[...]                      # (R, 1) int32

    R, V = s.shape
    col = lax.broadcasted_iota(jnp.int32, (R, V), 1)
    onehot = col == labels                                            # (R, V)
    valid = (labels != ignore_idx).astype(jnp.float32)                # (R, 1)

    # ---- raw-logit stats needed by the CE term ----
    m_s = jnp.max(s, axis=-1, keepdims=True)                          # (R, 1)
    picked = jnp.sum(jnp.where(onehot, s, 0.0), axis=-1, keepdims=True)  # (R,1)

    # ---- temperature-scaled student / teacher softmax stats (KL term) ----
    if inv_temp == 1.0:
        ss, ts = s, t
        m_ss = m_s                      # reuse raw max when T == 1
    else:
        ss = s * inv_temp
        ts = t * inv_temp
        m_ss = jnp.max(ss, axis=-1, keepdims=True)

    z_s = ss - m_ss                                                   # (R, V)
    sum_s = jnp.sum(jnp.exp(z_s), axis=-1, keepdims=True)             # (R, 1)
    lse_s = jnp.log(sum_s)

    m_ts = jnp.max(ts, axis=-1, keepdims=True)
    z_t = ts - m_ts                                                   # (R, V)
    exp_zt = jnp.exp(z_t)
    sum_t = jnp.sum(exp_zt, axis=-1, keepdims=True)                   # (R, 1)
    lse_t = jnp.log(sum_t)
    q = exp_zt / sum_t                                                # softmax(teacher/T)

    # KLDivLoss(input=log_softmax(s/T), target=softmax(t/T)):
    #   sum_j q_j*(log q_j - log p_j)
    # = sum_j q_j*(z_t_j - z_s_j) + (sum_j q_j)*(lse_s - lse_t)
    # (avoids materializing the full (R,V) log-softmax tensors)
    sum_q = jnp.sum(q, axis=-1, keepdims=True)                        # (R, 1)
    kl_rows = (jnp.sum(q * (z_t - z_s), axis=-1, keepdims=True)
               + sum_q * (lse_s - lse_t))                             # (R, 1)

    # CrossEntropy on the RAW student logits (valid rows only).
    if inv_temp == 1.0:
        lse_s_raw = lse_s
    else:
        lse_s_raw = jnp.log(jnp.sum(jnp.exp(s - m_s), axis=-1, keepdims=True))
    ce_rows = -(picked - m_s - lse_s_raw) * valid                     # (R, 1)

    kl_ref[...] += jnp.sum(kl_rows, axis=0, keepdims=True)
    ce_ref[...] += jnp.sum(ce_rows, axis=0, keepdims=True)
    cnt_ref[...] += jnp.sum(valid, axis=0, keepdims=True)


def kl_div_loss(student_logits, teacher_logits, labels, *,
                temperature=1.0, ignore_idx=-100,
                distillation_loss_weight=0.5,
                row_tile=None, num_chunks=None,
                vmem_limit_bytes=48 * 1024 * 1024):
    """Returns (loss, student_label_loss, distillation_loss) like the PyTorch module."""
    assert student_logits.shape == teacher_logits.shape
    # PyTorch KLDivLoss(reduction='batchmean') divides by input.size(0), i.e.
    # the ORIGINAL leading dim of the (un-flattened) logits.
    B = student_logits.shape[0]
    V = student_logits.shape[-1]

    # Keep the native dtype for the HBM->VMEM transfer (bf16 stays bf16);
    # the kernel upcasts to fp32 internally.
    s2 = student_logits.reshape(-1, V)
    t2 = teacher_logits.reshape(-1, V)
    l2 = labels.reshape(-1, 1).astype(jnp.int32)
    N = s2.shape[0]

    # --- tile sizing: biggest row tile that fits a conservative VMEM budget ---
    itemsize = max(jnp.dtype(s2.dtype).itemsize, jnp.dtype(t2.dtype).itemsize)
    # 2 inputs x 2 pipeline buffers in native dtype + ~6 fp32 (R,V) temporaries.
    per_row_bytes = V * (4 * itemsize + 6 * 4)
    budget = 24 * 1024 * 1024
    if row_tile is None:
        row_tile = max(8, min(512, (budget // per_row_bytes) // 8 * 8))
        row_tile = min(row_tile, ((N + 7) // 8) * 8)   # don't over-pad tiny inputs
    # TODO(synk): for very large vocabularies (V >= 64K) also tile the vocab
    # axis with an online logsumexp instead of whole-row blocks.

    total_tiles = -(-N // row_tile)                    # ceil div
    if num_chunks is None:
        num_chunks = 2 if total_tiles >= 2 else 1      # megacore / v7x: 2 TCs
    num_chunks = max(1, min(num_chunks, total_tiles))
    tiles_per_chunk = -(-total_tiles // num_chunks)
    padded_N = num_chunks * tiles_per_chunk * row_tile

    pad = padded_N - N
    if pad:
        # Zero-padded logits make student == teacher softmax on padded rows ->
        # KL term 0; labels padded with ignore_idx -> CE term 0 and not counted.
        s2 = jnp.pad(s2, ((0, pad), (0, 0)))
        t2 = jnp.pad(t2, ((0, pad), (0, 0)))
        l2 = jnp.pad(l2, ((0, pad), (0, 0)), constant_values=ignore_idx)

    kernel = functools.partial(_kl_ce_kernel,
                               inv_temp=1.0 / float(temperature),
                               ignore_idx=int(ignore_idx))

    row_map = lambda c, j, T=tiles_per_chunk: (c * T + j, 0)
    acc_map = lambda c, j: (c, 0, 0)
    acc_spec = pl.BlockSpec((None, 1, 1), acc_map)     # kernel sees a (1,1) ref
    acc_shape = jax.ShapeDtypeStruct((num_chunks, 1, 1), jnp.float32)

    kl_parts, ce_parts, cnt_parts = pl.pallas_call(
        kernel,
        out_shape=(acc_shape, acc_shape, acc_shape),
        grid_spec=pltpu.PrefetchScalarGridSpec(
            num_scalar_prefetch=0,
            grid=(num_chunks, tiles_per_chunk),
            in_specs=[pl.BlockSpec((row_tile, V), row_map),
                      pl.BlockSpec((row_tile, V), row_map),
                      pl.BlockSpec((row_tile, 1), row_map)],
            out_specs=(acc_spec, acc_spec, acc_spec)),
        compiler_params=pltpu.CompilerParams(
            dimension_semantics=("parallel", "arbitrary"),
            vmem_limit_bytes=vmem_limit_bytes),
    )(s2, t2, l2)

    kl_sum = jnp.sum(kl_parts)
    ce_sum = jnp.sum(ce_parts)
    cnt = jnp.sum(cnt_parts)

    distillation_loss = (kl_sum / B) * (temperature ** 2)
    # Guard the all-ignored case (cnt == 0) instead of producing NaN.
    student_label_loss = jnp.where(cnt > 0, ce_sum / jnp.maximum(cnt, 1.0), 0.0)
    w = distillation_loss_weight
    loss = w * distillation_loss + (1.0 - w) * student_label_loss
    return loss, student_label_loss, distillation_loss


def _reference(student, teacher, labels, *, temperature, ignore_idx, w):
    """Pure-JAX reference matching the PyTorch module semantics."""
    V = student.shape[-1]
    s = student.astype(jnp.float32)
    t = teacher.astype(jnp.float32)
    log_p = jax.nn.log_softmax(s / temperature, axis=-1)
    log_q = jax.nn.log_softmax(t / temperature, axis=-1)
    q = jnp.exp(log_q)
    kl = jnp.sum(q * (log_q - log_p)) / student.shape[0] * (temperature ** 2)

    s_flat = s.reshape(-1, V)
    l_flat = labels.reshape(-1)
    logp = jax.nn.log_softmax(s_flat, axis=-1)
    valid = l_flat != ignore_idx
    picked = jnp.take_along_axis(logp, jnp.clip(l_flat, 0)[:, None], axis=-1)[:, 0]
    ce = -jnp.sum(jnp.where(valid, picked, 0.0)) / jnp.maximum(
        jnp.sum(valid.astype(jnp.float32)), 1.0)
    loss = w * kl + (1.0 - w) * ce
    return loss, ce, kl


if __name__ == "__main__":
    # Small synthetic shapes: batch=2, seq=8, vocab=32
    B, S, V = 2, 8, 32
    key = jax.random.PRNGKey(0)
    k1, k2, k3 = jax.random.split(key, 3)

    student = jax.random.normal(k1, (B, S, V), dtype=jnp.float32)
    teacher = jax.random.normal(k2, (B, S, V), dtype=jnp.float32)
    labels = jax.random.randint(k3, (B, S), 0, V, dtype=jnp.int32)
    # mark a couple of positions as ignored
    labels = labels.at[0, 0].set(-100).at[1, 3].set(-100)

    # Exercise both specializations (T == 1 shared-softmax path and T != 1 path).
    for T in (1.0, 2.0):
        out = kl_div_loss(student, teacher, labels,
                          temperature=T, ignore_idx=-100,
                          distillation_loss_weight=0.5)
        out = jax.block_until_ready(out)
        ref = _reference(student, teacher, labels,
                         temperature=T, ignore_idx=-100, w=0.5)
        for a, b in zip(out, ref):
            assert jnp.allclose(a, b, rtol=1e-4, atol=1e-4), (T, a, b)

    print("KERNEL_OK")
</pallas_src>

<mosaic_0001>
module attributes {stable_mosaic.version = 11 : i64} {
  func.func @_kl_ce_kernel(%arg0: i32, %arg1: i32, %arg2: memref<16x32xf32, #tpu.memory_space<vmem>>, %arg3: memref<16x32xf32, #tpu.memory_space<vmem>>, %arg4: memref<16x1xi32, #tpu.memory_space<vmem>>, %arg5: memref<1x1x1xf32, #tpu.memory_space<vmem>>, %arg6: memref<1x1x1xf32, #tpu.memory_space<vmem>>, %arg7: memref<1x1x1xf32, #tpu.memory_space<vmem>>) attributes {dimension_semantics = [#tpu.dimension_semantics<parallel>, #tpu.dimension_semantics<arbitrary>], iteration_bounds = array<i64: 1, 1>, scalar_prefetch = 0 : i64, scratch_operands = 0 : i64, tpu.core_type = #tpu.core_type<tc>, window_params = [{transform_indices = @transform_0, window_bounds = array<i64: 16, 32>}, {transform_indices = @transform_1, window_bounds = array<i64: 16, 32>}, {transform_indices = @transform_2, window_bounds = array<i64: 16, 1>}, {transform_indices = @transform_3, window_bounds = array<i64: 1, 1, 1>}, {transform_indices = @transform_4, window_bounds = array<i64: 1, 1, 1>}, {transform_indices = @transform_5, window_bounds = array<i64: 1, 1, 1>}]} {
    %c0_i32 = arith.constant 0 : i32
    %0 = arith.cmpi eq, %arg1, %c0_i32 : i32
    %1 = arith.extui %0 : i1 to i32
    %c0_i32_0 = arith.constant 0 : i32
    %2 = arith.cmpi ne, %1, %c0_i32_0 : i32
    scf.if %2 {
      %cst_35 = arith.constant 0.000000e+00 : f32
      %73 = vector.broadcast %cst_35 : f32 to vector<1x1xf32>
      %c0_36 = arith.constant 0 : index
      %c0_37 = arith.constant 0 : index
      %c0_38 = arith.constant 0 : index
      %74 = vector.load %arg5[%c0_36, %c0_37, %c0_38] : memref<1x1x1xf32, #tpu.memory_space<vmem>>, vector<1x1x1xf32>
      %75 = vector.shape_cast %74 : vector<1x1x1xf32> to vector<1x1xf32>
      %76 = vector.shape_cast %73 : vector<1x1xf32> to vector<1x1x1xf32>
      tpu.vector_store %arg5[%c0_36, %c0_37, %c0_38], %76 {strides = array<i32>} : memref<1x1x1xf32, #tpu.memory_space<vmem>>, vector<1x1x1xf32>,
      %cst_39 = arith.constant 0.000000e+00 : f32
      %77 = vector.broadcast %cst_39 : f32 to vector<1x1xf32>
      %c0_40 = arith.constant 0 : index
      %c0_41 = arith.constant 0 : index
      %c0_42 = arith.constant 0 : index
      %78 = vector.load %arg6[%c0_40, %c0_41, %c0_42] : memref<1x1x1xf32, #tpu.memory_space<vmem>>, vector<1x1x1xf32>
      %79 = vector.shape_cast %78 : vector<1x1x1xf32> to vector<1x1xf32>
      %80 = vector.shape_cast %77 : vector<1x1xf32> to vector<1x1x1xf32>
      tpu.vector_store %arg6[%c0_40, %c0_41, %c0_42], %80 {strides = array<i32>} : memref<1x1x1xf32, #tpu.memory_space<vmem>>, vector<1x1x1xf32>,
      %cst_43 = arith.constant 0.000000e+00 : f32
      %81 = vector.broadcast %cst_43 : f32 to vector<1x1xf32>
      %c0_44 = arith.constant 0 : index
      %c0_45 = arith.constant 0 : index
      %c0_46 = arith.constant 0 : index
      %82 = vector.load %arg7[%c0_44, %c0_45, %c0_46] : memref<1x1x1xf32, #tpu.memory_space<vmem>>, vector<1x1x1xf32>
      %83 = vector.shape_cast %82 : vector<1x1x1xf32> to vector<1x1xf32>
      %84 = vector.shape_cast %81 : vector<1x1xf32> to vector<1x1x1xf32>
      tpu.vector_store %arg7[%c0_44, %c0_45, %c0_46], %84 {strides = array<i32>} : memref<1x1x1xf32, #tpu.memory_space<vmem>>, vector<1x1x1xf32>,
    } else {
    }
    %c0 = arith.constant 0 : index
    %c0_1 = arith.constant 0 : index
    %3 = vector.load %arg2[%c0, %c0_1] : memref<16x32xf32, #tpu.memory_space<vmem>>, vector<16x32xf32>
    %c0_2 = arith.constant 0 : index
    %c0_3 = arith.constant 0 : index
    %4 = vector.load %arg3[%c0_2, %c0_3] : memref<16x32xf32, #tpu.memory_space<vmem>>, vector<16x32xf32>
    %c0_4 = arith.constant 0 : index
    %c0_5 = arith.constant 0 : index
    %5 = vector.load %arg4[%c0_4, %c0_5] : memref<16x1xi32, #tpu.memory_space<vmem>>, vector<16x1xi32>
    %6 = tpu.iota {dimensions = array<i32: 1>} : vector<16x32xi32>
    %7 = vector.broadcast %5 : vector<16x1xi32> to vector<16x32xi32>
    %8 = arith.cmpi eq, %6, %7 : vector<16x32xi32>
    %c-100_i32 = arith.constant -100 : i32
    %9 = vector.broadcast %c-100_i32 : i32 to vector<16x1xi32>
    %10 = arith.cmpi ne, %5, %9 : vector<16x1xi32>
    %11 = arith.extui %10 : vector<16x1xi1> to vector<16x1xi32>
    %12 = arith.sitofp %11 : vector<16x1xi32> to vector<16x1xf32>
    %cst = arith.constant dense<0xFF800000> : vector<16xf32>
    %13 = vector.multi_reduction <maximumf>, %3, %cst [1] : vector<16x32xf32> to vector<16xf32>
    %14 = vector.shape_cast %13 : vector<16xf32> to vector<16x1xf32>
    %cst_6 = arith.constant 0.000000e+00 : f32
    %15 = vector.broadcast %cst_6 : f32 to vector<16x32xf32>
    %16 = arith.select %8, %3, %15 : vector<16x32xi1>, vector<16x32xf32>
    %cst_7 = arith.constant dense<0.000000e+00> : vector<16xf32>
    %17 = vector.multi_reduction <add>, %16, %cst_7 [1] : vector<16x32xf32> to vector<16xf32>
    %18 = vector.shape_cast %17 : vector<16xf32> to vector<16x1xf32>
    %19 = vector.broadcast %14 : vector<16x1xf32> to vector<16x32xf32>
    %20 = arith.subf %3, %19 : vector<16x32xf32>
    %21 = math.exp %20 : vector<16x32xf32>
    %cst_8 = arith.constant dense<0.000000e+00> : vector<16xf32>
    %22 = vector.multi_reduction <add>, %21, %cst_8 [1] : vector<16x32xf32> to vector<16xf32>
    %23 = vector.shape_cast %22 : vector<16xf32> to vector<16x1xf32>
    %24 = math.log %23 : vector<16x1xf32>
    %cst_9 = arith.constant dense<0xFF800000> : vector<16xf32>
    %25 = vector.multi_reduction <maximumf>, %4, %cst_9 [1] : vector<16x32xf32> to vector<16xf32>
    %26 = vector.shape_cast %25 : vector<16xf32> to vector<16x1xf32>
    %27 = vector.broadcast %26 : vector<16x1xf32> to vector<16x32xf32>
    %28 = arith.subf %4, %27 : vector<16x32xf32>
    %29 = math.exp %28 : vector<16x32xf32>
    %cst_10 = arith.constant dense<0.000000e+00> : vector<16xf32>
    %30 = vector.multi_reduction <add>, %29, %cst_10 [1] : vector<16x32xf32> to vector<16xf32>
    %31 = vector.shape_cast %30 : vector<16xf32> to vector<16x1xf32>
    %32 = math.log %31 : vector<16x1xf32>
    %33 = vector.broadcast %31 : vector<16x1xf32> to vector<16x32xf32>
    %34 = arith.divf %29, %33 : vector<16x32xf32>
    %cst_11 = arith.constant dense<0.000000e+00> : vector<16xf32>
    %35 = vector.multi_reduction <add>, %34, %cst_11 [1] : vector<16x32xf32> to vector<16xf32>
    %36 = vector.shape_cast %35 : vector<16xf32> to vector<16x1xf32>
    %37 = arith.subf %28, %20 : vector<16x32xf32>
    %38 = arith.mulf %34, %37 : vector<16x32xf32>
    %cst_12 = arith.constant dense<0.000000e+00> : vector<16xf32>
    %39 = vector.multi_reduction <add>, %38, %cst_12 [1] : vector<16x32xf32> to vector<16xf32>
    %40 = vector.shape_cast %39 : vector<16xf32> to vector<16x1xf32>
    %41 = arith.subf %24, %32 : vector<16x1xf32>
    %42 = arith.mulf %36, %41 : vector<16x1xf32>
    %43 = arith.addf %40, %42 : vector<16x1xf32>
    %44 = arith.subf %18, %14 : vector<16x1xf32>
    %45 = arith.subf %44, %24 : vector<16x1xf32>
    %cst_13 = arith.constant 0.000000e+00 : f32
    %46 = vector.broadcast %cst_13 : f32 to vector<16x1xf32>
    %47 = arith.subf %46, %45 : vector<16x1xf32>
    %48 = arith.mulf %47, %12 : vector<16x1xf32>
    %c0_14 = arith.constant 0 : index
    %c0_15 = arith.constant 0 : index
    %c0_16 = arith.constant 0 : index
    %49 = vector.load %arg5[%c0_14, %c0_15, %c0_16] : memref<1x1x1xf32, #tpu.memory_space<vmem>>, vector<1x1x1xf32>
    %50 = vector.shape_cast %49 : vector<1x1x1xf32> to vector<1x1xf32>
    %cst_17 = arith.constant dense<0.000000e+00> : vector<1xf32>
    %51 = vector.multi_reduction <add>, %43, %cst_17 [0] : vector<16x1xf32> to vector<1xf32>
    %52 = vector.shape_cast %51 : vector<1xf32> to vector<1x1xf32>
    %53 = arith.addf %50, %52 : vector<1x1xf32>
    %c0_18 = arith.constant 0 : index
    %c0_19 = arith.constant 0 : index
    %c0_20 = arith.constant 0 : index
    %54 = vector.load %arg5[%c0_18, %c0_19, %c0_20] : memref<1x1x1xf32, #tpu.memory_space<vmem>>, vector<1x1x1xf32>
    %55 = vector.shape_cast %54 : vector<1x1x1xf32> to vector<1x1xf32>
    %56 = vector.shape_cast %53 : vector<1x1xf32> to vector<1x1x1xf32>
    tpu.vector_store %arg5[%c0_18, %c0_19, %c0_20], %56 {strides = array<i32>} : memref<1x1x1xf32, #tpu.memory_space<vmem>>, vector<1x1x1xf32>,
    %c0_21 = arith.constant 0 : index
    %c0_22 = arith.constant 0 : index
    %c0_23 = arith.constant 0 : index
    %57 = vector.load %arg6[%c0_21, %c0_22, %c0_23] : memref<1x1x1xf32, #tpu.memory_space<vmem>>, vector<1x1x1xf32>
    %58 = vector.shape_cast %57 : vector<1x1x1xf32> to vector<1x1xf32>
    %cst_24 = arith.constant dense<0.000000e+00> : vector<1xf32>
    %59 = vector.multi_reduction <add>, %48, %cst_24 [0] : vector<16x1xf32> to vector<1xf32>
    %60 = vector.shape_cast %59 : vector<1xf32> to vector<1x1xf32>
    %61 = arith.addf %58, %60 : vector<1x1xf32>
    %c0_25 = arith.constant 0 : index
    %c0_26 = arith.constant 0 : index
    %c0_27 = arith.constant 0 : index
    %62 = vector.load %arg6[%c0_25, %c0_26, %c0_27] : memref<1x1x1xf32, #tpu.memory_space<vmem>>, vector<1x1x1xf32>
    %63 = vector.shape_cast %62 : vector<1x1x1xf32> to vector<1x1xf32>
    %64 = vector.shape_cast %61 : vector<1x1xf32> to vector<1x1x1xf32>
    tpu.vector_store %arg6[%c0_25, %c0_26, %c0_27], %64 {strides = array<i32>} : memref<1x1x1xf32, #tpu.memory_space<vmem>>, vector<1x1x1xf32>,
    %c0_28 = arith.constant 0 : index
    %c0_29 = arith.constant 0 : index
    %c0_30 = arith.constant 0 : index
    %65 = vector.load %arg7[%c0_28, %c0_29, %c0_30] : memref<1x1x1xf32, #tpu.memory_space<vmem>>, vector<1x1x1xf32>
    %66 = vector.shape_cast %65 : vector<1x1x1xf32> to vector<1x1xf32>
    %cst_31 = arith.constant dense<0.000000e+00> : vector<1xf32>
    %67 = vector.multi_reduction <add>, %12, %cst_31 [0] : vector<16x1xf32> to vector<1xf32>
    %68 = vector.shape_cast %67 : vector<1xf32> to vector<1x1xf32>
    %69 = arith.addf %66, %68 : vector<1x1xf32>
    %c0_32 = arith.constant 0 : index
    %c0_33 = arith.constant 0 : index
    %c0_34 = arith.constant 0 : index
    %70 = vector.load %arg7[%c0_32, %c0_33, %c0_34] : memref<1x1x1xf32, #tpu.memory_space<vmem>>, vector<1x1x1xf32>
    %71 = vector.shape_cast %70 : vector<1x1x1xf32> to vector<1x1xf32>
    %72 = vector.shape_cast %69 : vector<1x1xf32> to vector<1x1x1xf32>
    tpu.vector_store %arg7[%c0_32, %c0_33, %c0_34], %72 {strides = array<i32>} : memref<1x1x1xf32, #tpu.memory_space<vmem>>, vector<1x1x1xf32>,
    return
  }
  func.func @transform_0(%arg0: i32, %arg1: i32) -> (i32, i32) {
    %c1_i32 = arith.constant 1 : i32
    %0 = arith.muli %arg0, %c1_i32 : i32
    %1 = arith.addi %0, %arg1 : i32
    %c0_i32 = arith.constant 0 : i32
    %c0_i32_0 = arith.constant 0 : i32
    return %1, %c0_i32 : i32, i32
  }
  func.func @transform_1(%arg0: i32, %arg1: i32) -> (i32, i32) {
    %c1_i32 = arith.constant 1 : i32
    %0 = arith.muli %arg0, %c1_i32 : i32
    %1 = arith.addi %0, %arg1 : i32
    %c0_i32 = arith.constant 0 : i32
    %c0_i32_0 = arith.constant 0 : i32
    return %1, %c0_i32 : i32, i32
  }
  func.func @transform_2(%arg0: i32, %arg1: i32) -> (i32, i32) {
    %c1_i32 = arith.constant 1 : i32
    %0 = arith.muli %arg0, %c1_i32 : i32
    %1 = arith.addi %0, %arg1 : i32
    %c0_i32 = arith.constant 0 : i32
    %c0_i32_0 = arith.constant 0 : i32
    return %1, %c0_i32 : i32, i32
  }
  func.func @transform_3(%arg0: i32, %arg1: i32) -> (i32, i32, i32) {
    %c0_i32 = arith.constant 0 : i32
    %c0_i32_0 = arith.constant 0 : i32
    %c0_i32_1 = arith.constant 0 : i32
    return %arg0, %c0_i32, %c0_i32_0 : i32, i32, i32
  }
  func.func @transform_4(%arg0: i32, %arg1: i32) -> (i32, i32, i32) {
    %c0_i32 = arith.constant 0 : i32
    %c0_i32_0 = arith.constant 0 : i32
    %c0_i32_1 = arith.constant 0 : i32
    return %arg0, %c0_i32, %c0_i32_0 : i32, i32, i32
  }
  func.func @transform_5(%arg0: i32, %arg1: i32) -> (i32, i32, i32) {
    %c0_i32 = arith.constant 0 : i32
    %c0_i32_0 = arith.constant 0 : i32
    %c0_i32_1 = arith.constant 0 : i32
    return %arg0, %c0_i32, %c0_i32_0 : i32, i32, i32
  }
}

</mosaic_0001>

<bundles_post_ra>
// kernel: tpu_custom_call.1
= control target key start
LH: loop header
LB: loop body
LE: loop exit
PB: predicated region body
PF: predicated region fallthrough
CT: control target
= control target key end

     0   :  { %11 = vsyncpa [#allocation3], 0  ;;  %s554_s0 = inlined_call_operand.vmem [shape: f32[16,32], index: 0, kind: input, shape index: {}]   ;;  %s555_s1 = inlined_call_operand.hbm [shape: f32[16,32], index: 1, kind: input, shape index: {}]   ;;  %s556_s2 = inlined_call_operand.vmem [shape: s32[16,1], index: 2, kind: input, shape index: {}]   ;;  %s557_s3 = inlined_call_operand.hbm [shape: f32[1,1,1], index: 3, kind: output, shape index: {0}]   ;;  %s558_s4 = inlined_call_operand.hbm [shape: f32[1,1,1], index: 4, kind: output, shape index: {1}]   ;;  %s559_s5 = inlined_call_operand.hbm [shape: f32[1,1,1], index: 5, kind: output, shape index: {2}]  }
   0x1   :  { %12 = vsyncpa [#allocation4], 0 }
   0x2   :  { %13 = vsyncpa [#allocation7], 0  ;;  %s416_s18 = smov [#allocation2]   ;;  %s322_s22 = scalar_lea.hbm %s555_s1, 256 }
   0x3   :  { %s33_s19 = sshll.u32 %s416_s18, 4  ;;  %p323_p0 = scmp.ne.s32.totalorder %s555_s1, %s322_s22  ;;  %s34_s19 = int_to_ptr.vmem [resolvable:$true] %s33_s19 }
   0x4   :  { %p326_p1 = scmp.lt.u32.totalorder %s322_s22, %s555_s1 }
   0x6   :  { %p328_p2 = pnand %p326_p1, %p323_p0 }
   0x8   :  { %331 = shalt.err (!%p328_p2)
}
   0x9   :  { %s332_s27 = scalar_lea.vmem %s34_s19, 256  ;;  %p337_p4 = scmp.lt.s32.totalorder %s34_s19, %s34_s19 }
   0xa   :  { %p333_p3 = scmp.ne.s32.totalorder %s34_s19, %s332_s27  ;;  %p338_p5 = scmp.lt.s32.totalorder %s332_s27, %s332_s27 }
   0xc   :  { %p339_p6 = por %p338_p5, %p337_p4 }
   0xe   :  { %p340_p7 = pnand %p339_p6, %p333_p3 }
  0x10   :  { %343 = shalt.err (!%p340_p7)
}
  0x11   :  { %s417_s28 = smov 128   ;;  %s418_s29 = smov 8  }
  0x12   :  { %39 = dma.hbm_to_vmem [thread:$0]  %s555_s1, 256, %s34_s19, [#allocation3], %s417_s28, %s417_s28, %s418_s29  }
  0x13   :  { %410 = dma.done.wait [#allocation3], 256  }
  0x14   :  { %411 = vsyncadd [#allocation3], 4294967040  ;;  %vm113_vm0 = vcmask 261120   ;;  %v93_v0 = vld [vmem:[#allocation2] sm:$0xff]  ;;  %v94_v2 = vld [vmem:[#allocation2 + $0x8] sm:$0xff]  ;;  %v419_v8 = vmov 0   ;;  %v97_v34 = vlaneseq }
  0x15   :  { %v91_v1 = vld [vmem:[%s554_s0] sm:$0xff]  ;;  %v144_v3 = vsel %vm113_vm0, %v93_v0, -inf  ;;  %v92_v5 = vld [vmem:[%s554_s0 + $0x8] sm:$0xff]  ;;  %v147_v6 = vsel %vm113_vm0, %v94_v2, -inf  ;;  %301 = vset.pattern.permute.xlu1 %v419_v8  ;;  %300 = vset.pattern.permute.xlu0 %v419_v8  ;;  %v420_v52 = vmov 0.0   ;;  %vm212_vm5 = vcmask 7168  }
  0x16   :  { %v114_v4 = vsel %vm113_vm0, %v91_v1, -inf  ;;  %145 = vmax.xlane.f32.xlu0 %v144_v3  ;;  %v117_v7 = vsel %vm113_vm0, %v92_v5, -inf  ;;  %v96_v25 = vld [vmem:[%s556_s2 + $0x8] sm:$0xff]  ;;  %v95_v26 = vld [vmem:[%s556_s2] sm:$0xff]  ;;  %v98_v36 = vand.u32 127, %v97_v34  ;;  %vm87_vm6 = vcmask 0  }
  0x17   :  { %115 = vmax.xlane.f32.xlu1 %v114_v4  ;;  %vm108_vm3 = vcmp.ne.s32.totalorder %v96_v25, 4294967196  ;;  %vm107_vm4 = vcmp.ne.s32.totalorder %v95_v26, 4294967196  ;;  %89 = vst.msk [vmem:[#allocation6] sm:$0x1] %vm87_vm6, %v420_v52  ;;  %88 = vst.msk [vmem:[#allocation5] sm:$0x1] %vm87_vm6, %v420_v52 }
  0x18   :  { %v291_v53 = vsel %vm108_vm3, 1.0, %v420_v52  ;;  %v290_v54 = vsel %vm107_vm4, 1.0, %v420_v52  ;;  %90 = vst.msk [vmem:[#allocation8] sm:$0x1] %vm87_vm6, %v420_v52  ;;  %s421_s2 = smov [#allocation6]   ;;  %s422_s14 = smov [#allocation8]  }
  0x19   :  { %v226_v56 = vsel %vm212_vm5, %v291_v53, 0.0  ;;  %v225_v57 = vsel %vm212_vm5, %v290_v54, 0.0  ;;  %s252_s13 = sshll.u32 %s421_s2, 4  ;;  %s262_s15 = sshll.u32 %s422_s14, 4  ;;  %s253_s13 = int_to_ptr.vmem [resolvable:$true] %s252_s13  ;;  %s508_s15 = int_to_ptr.vmem [resolvable:$true] %s262_s15 }
  0x1a   :  { %148 = vmax.xlane.f32.xlu0 %v147_v6  ;;  %v227_v58 = vadd.f32 %v226_v56, %v225_v57  ;;  %s344_s16 = scalar_lea.vmem %s253_s13, 16  ;;  %s348_s17 = scalar_lea.vmem %s253_s13, 32 }
  0x1b   :  { %118 = vmax.xlane.f32.xlu1 %v117_v7  ;;  %p345_p8 = scmp.ne.s32.totalorder %s253_s13, %s344_s16  ;;  %p349_p9 = scmp.lt.s32.totalorder %s253_s13, %s253_s13 }
  0x1c   :  { %v228_v59 = vrot.slane %v227_v58, 4  ;;  %p350_p10 = scmp.lt.s32.totalorder %s348_s17, %s344_s16 }
  0x1e   :  { %v229_v60 = vadd.f32 %v228_v59, %v227_v58  ;;  %p351_p11 = por %p350_p10, %p349_p9 }
  0x20   :  { %v230_v61 = vrot.slane %v229_v60, 2  ;;  %p352_p12 = pnand %p351_p11, %p345_p8 }
  0x22   :  { %v231_v62 = vadd.f32 %v230_v61, %v229_v60 }
  0x24   :  { %v232_v63 = vrot.slane %v231_v62, 1 }
  0xa3   :  { %v146_v9 = vpop.xlane.xlu0 %145 }
  0xa4   :  { %v476_v10 = vpop.xlane.xlu1 %115  ;;  %v150_v11 = vsub.f32 %v93_v0, %v146_v9  ;;  %v233_v0 = vadd.f32 %v232_v63, %v231_v62 }
  0xa5   :  { %v128_v12 = vsub.f32 %v91_v1, %v476_v10 }
  0xa6   :  { %v152_v13 = vmul.f32 1.442695, %v150_v11 }
  0xa7   :  { %v176_v14 = vsub.f32 %v150_v11, %v128_v12  ;;  %v149_v15 = vpop.xlane.xlu0 %148  ;;  %v130_v28 = vmul.f32 1.442695, %v128_v12 }
  0xa8   :  { %v479_v16 = vpop.xlane.xlu1 %118  ;;  %302 = vpow2.f32 %v152_v13  ;;  %v151_v17 = vsub.f32 %v94_v2, %v149_v15 }
  0xa9   :  { %v129_v18 = vsub.f32 %v92_v5, %v479_v16 }
  0xaa   :  { %v154_v19 = vmul.f32 1.442695, %v151_v17 }
  0xab   :  { %v177_v20 = vsub.f32 %v151_v17, %v129_v18  ;;  %v132_v27 = vmul.f32 1.442695, %v129_v18 }
  0xac   :  { %304 = vpow2.f32 %v154_v19 }
  0xad   :  { %306 = vpow2.f32 %v132_v27 }
  0xae   :  { %308 = vpow2.f32 %v130_v28 }
  0xb2   :  { %v303_v21 = vpop.eup %302 }
  0xb3   :  { %v156_v22 = vsel %vm113_vm0, %v303_v21, 0.0 }
  0xb4   :  { %157 = vadd.xlane.f32.xlu0 %v156_v22 }
  0xb6   :  { %v305_v23 = vpop.eup %304 }
  0xb7   :  { %v159_v24 = vsel %vm113_vm0, %v305_v23, 0.0  ;;  %v307_v29 = vpop.eup %306 }
  0xb8   :  { %160 = vadd.xlane.f32.xlu1 %v159_v24  ;;  %v137_v30 = vsel %vm113_vm0, %v307_v29, 0.0  ;;  %v309_v31 = vpop.eup %308 }
  0xb9   :  { %v134_v32 = vsel %vm113_vm0, %v309_v31, 0.0 }
  0xc9   :  { %103 = vperm.xlu1 %301, %v96_v25  }
  0xca   :  { %100 = vperm.xlu0 %300, %v95_v26  }
  0xe9   :  { %138 = vadd.xlane.f32.xlu0 %v137_v30 }
  0xed   :  { %135 = vadd.xlane.f32.xlu1 %v134_v32 }
 0x141   :  { %v158_v33 = vpop.xlane.xlu0 %157 }
 0x142   :  { %310 = vrcp.f32 %v158_v33 }
 0x145   :  { %v161_v35 = vpop.xlane.xlu1 %160 }
 0x146   :  { %312 = vrcp.f32 %v161_v35 }
 0x149   :  { %v101_v37 = vpop.permute.xlu0 %100  ;;  %v104_v38 = vpop.permute.xlu1 %103 }
 0x14a   :  { %vm105_vm1 = vcmp.eq.s32.totalorder %v98_v36, %v101_v37  ;;  %vm106_vm2 = vcmp.eq.s32.totalorder %v98_v36, %v104_v38 }
 0x14b   :  { %v120_v39 = vsel %vm105_vm1, %v91_v1, 0.0  ;;  %v121_v40 = vsel %vm106_vm2, %v92_v5, 0.0  ;;  %v224_v1 = vld [vmem:[#allocation8] sm:$0x1] }
 0x14c   :  { %v122_v41 = vsel %vm113_vm0, %v120_v39, 0.0  ;;  %v311_v42 = vpop.eup %310  ;;  %v125_v43 = vsel %vm113_vm0, %v121_v40, 0.0  ;;  %v234_v2 = vadd.f32 %v233_v0, %v224_v1 }
 0x14d   :  { %123 = vadd.xlane.f32.xlu1 %v122_v41  ;;  %v167_v44 = vmul.f32 %v311_v42, %v303_v21 }
 0x14e   :  { %235 = vst.msk [vmem:[#allocation8] sm:$0x1] %vm87_vm6, %v234_v2 }
 0x14f   :  { %v170_v46 = vsel %vm113_vm0, %v167_v44, 0.0  ;;  %v178_v49 = vmul.f32 %v176_v14, %v167_v44 }
 0x150   :  { %v313_v45 = vpop.eup %312 }
 0x151   :  { %126 = vadd.xlane.f32.xlu1 %v125_v43  ;;  %v169_v47 = vmul.f32 %v313_v45, %v305_v23  ;;  %v180_v50 = vsel %vm113_vm0, %v178_v49, 0.0  ;;  %v211_v43 = vld [vmem:[#allocation6] sm:$0x1] }
 0x153   :  { %v173_v48 = vsel %vm113_vm0, %v169_v47, 0.0  ;;  %v179_v51 = vmul.f32 %v177_v20, %v169_v47 }
 0x155   :  { %171 = vadd.xlane.f32.xlu1 %v170_v46  ;;  %v183_v55 = vsel %vm113_vm0, %v179_v51, 0.0 }
 0x159   :  { %174 = vadd.xlane.f32.xlu1 %v173_v48 }
 0x15d   :  { %181 = vadd.xlane.f32.xlu1 %v180_v50 }
 0x161   :  { %184 = vadd.xlane.f32.xlu1 %v183_v55 }
 0x176   :  { %v139_v4 = vpop.xlane.xlu0 %138 }
 0x17a   :  { %v136_v3 = vpop.xlane.xlu1 %135 }
 0x17b   :  { %314 = vlog2.f32 %v136_v3 }
 0x17c   :  { %316 = vlog2.f32 %v139_v4 }
 0x17d   :  { %318 = vlog2.f32 %v158_v33 }
 0x17e   :  { %320 = vlog2.f32 %v161_v35 }
 0x185   :  { %v315_v5 = vpop.eup %314 }
 0x186   :  { %v141_v7 = vmul.f32 0.6931472, %v315_v5  ;;  %v317_v9 = vpop.eup %316 }
 0x187   :  { %v143_v13 = vmul.f32 0.6931472, %v317_v9  ;;  %v319_v21 = vpop.eup %318 }
 0x188   :  { %v321_v23 = vpop.eup %320  ;;  %v163_v27 = vmul.f32 0.6931472, %v319_v21 }
 0x189   :  { %v165_v28 = vmul.f32 0.6931472, %v321_v23 }
 0x18a   :  { %v186_v31 = vsub.f32 %v141_v7, %v163_v27 }
 0x18b   :  { %v187_v32 = vsub.f32 %v143_v13, %v165_v28 }
 0x1da   :  { %v124_v6 = vpop.xlane.xlu1 %123 }
 0x1db   :  { %v192_v8 = vsub.f32 %v124_v6, %v476_v10 }
 0x1dd   :  { %v194_v11 = vsub.f32 %v192_v8, %v141_v7 }
 0x1de   :  { %v127_v12 = vpop.xlane.xlu1 %126 }
 0x1df   :  { %v196_v14 = vsub.f32 0.0, %v194_v11  ;;  %v193_v15 = vsub.f32 %v127_v12, %v479_v16 }
 0x1e1   :  { %v195_v17 = vsub.f32 %v193_v15, %v143_v13  ;;  %v198_v19 = vmul.f32 %v290_v54, %v196_v14 }
 0x1e2   :  { %v172_v18 = vpop.xlane.xlu1 %171 }
 0x1e3   :  { %v197_v20 = vsub.f32 0.0, %v195_v17  ;;  %v213_v25 = vsel %vm212_vm5, %v198_v19, 0.0  ;;  %v188_v33 = vmul.f32 %v186_v31, %v172_v18 }
 0x1e5   :  { %v199_v22 = vmul.f32 %v291_v53, %v197_v20 }
 0x1e6   :  { %v175_v24 = vpop.xlane.xlu1 %174 }
 0x1e7   :  { %v214_v10 = vsel %vm212_vm5, %v199_v22, 0.0  ;;  %v189_v34 = vmul.f32 %v187_v32, %v175_v24 }
 0x1e8   :  { %v215_v26 = vadd.f32 %v214_v10, %v213_v25 }
 0x1ea   :  { %v216_v29 = vrot.slane %v215_v26, 4  ;;  %v182_v30 = vpop.xlane.xlu1 %181 }
 0x1eb   :  { %v190_v37 = vadd.f32 %v188_v33, %v182_v30 }
 0x1ec   :  { %v217_v16 = vadd.f32 %v216_v29, %v215_v26 }
 0x1ee   :  { %v218_v35 = vrot.slane %v217_v16, 2  ;;  %v185_v36 = vpop.xlane.xlu1 %184 }
 0x1ef   :  { %v191_v38 = vadd.f32 %v189_v34, %v185_v36 }
 0x1f0   :  { %v219_v39 = vadd.f32 %v218_v35, %v217_v16 }
 0x1f1   :  { %v201_v40 = vadd.f32 %v191_v38, %v190_v37 }
 0x1f2   :  { %v220_v41 = vrot.slane %v219_v39, 1 }
 0x1f3   :  { %v202_v42 = vrot.slane %v201_v40, 4 }
 0x1f4   :  { %v221_v44 = vadd.f32 %v220_v41, %v219_v39 }
 0x1f5   :  { %v203_v45 = vadd.f32 %v202_v42, %v201_v40 }
 0x1f6   :  { %v222_v46 = vadd.f32 %v221_v44, %v211_v43 }
 0x1f7   :  { %v204_v47 = vrot.slane %v203_v45, 2 }
 0x1f8   :  { %223 = vst.msk [vmem:[#allocation6] sm:$0x1] %vm87_vm6, %v222_v46 }
 0x1f9   :  { %v205_v48 = vadd.f32 %v204_v47, %v203_v45 }
 0x1fa   :  { %355 = shalt.err (!%p352_p12)
}
 0x1fb   :  { %s356_s20 = scalar_lea.hbm %s558_s4, 16 }
 0x1fc   :  { %p357_p13 = scmp.ne.s32.totalorder %s558_s4, %s356_s20  ;;  %p360_p0 = scmp.lt.u32.totalorder %s356_s20, %s558_s4 }
 0x1fe   :  { %p362_p1 = pnand %p360_p0, %p357_p13 }
 0x200   :  { %365 = shalt.err (!%p362_p1)
}
 0x201   :  { %255 = dma.vmem_to_hbm [thread:$0]  %s253_s13, 16, %s558_s4, [#allocation7]  }
 0x202   :  { %s366_s27 = scalar_lea.vmem %s508_s15, 16  ;;  %s370_s28 = scalar_lea.vmem %s508_s15, 32 }
 0x203   :  { %p367_p2 = scmp.ne.s32.totalorder %s508_s15, %s366_s27  ;;  %p371_p3 = scmp.lt.s32.totalorder %s508_s15, %s508_s15 }
 0x204   :  { %p372_p4 = scmp.lt.s32.totalorder %s370_s28, %s366_s27 }
 0x206   :  { %p373_p5 = por %p372_p4, %p371_p3 }
 0x208   :  { %p374_p6 = pnand %p373_p5, %p367_p2 }
 0x20a   :  { %377 = shalt.err (!%p374_p6)
}
 0x20b   :  { %s378_s6 = scalar_lea.hbm %s559_s5, 16 }
 0x20c   :  { %p379_p7 = scmp.ne.s32.totalorder %s559_s5, %s378_s6  ;;  %p382_p8 = scmp.lt.u32.totalorder %s378_s6, %s559_s5 }
 0x20e   :  { %p384_p9 = pnand %p382_p8, %p379_p7 }
 0x210   :  { %387 = shalt.err (!%p384_p9)
}
 0x211   :  { %265 = dma.vmem_to_hbm [thread:$0]  %s508_s15, 16, %s559_s5, [#allocation7]   ;;  %v206_v49 = vrot.slane %v205_v48, 1  ;;  %v200_v50 = vld [vmem:[#allocation5] sm:$0x1] }
 0x212   :  { %s423_s1 = smov [#allocation5]  }
 0x213   :  { %s242_s11 = sshll.u32 %s423_s1, 4  ;;  %v207_v51 = vadd.f32 %v206_v49, %v205_v48  ;;  %s243_s11 = int_to_ptr.vmem [resolvable:$true] %s242_s11 }
 0x214   :  { %s388_s12 = scalar_lea.vmem %s243_s11, 16  ;;  %s392_s2 = scalar_lea.vmem %s243_s11, 32 }
 0x215   :  { %v208_v52 = vadd.f32 %v207_v51, %v200_v50  ;;  %p389_p10 = scmp.ne.s32.totalorder %s243_s11, %s388_s12  ;;  %p393_p11 = scmp.lt.s32.totalorder %s243_s11, %s243_s11 }
 0x216   :  { %p394_p12 = scmp.lt.s32.totalorder %s392_s2, %s388_s12 }
 0x217   :  { %210 = vst.msk [vmem:[#allocation5] sm:$0x1] %vm87_vm6, %v208_v52 }
 0x218   :  { %p395_p13 = por %p394_p12, %p393_p11 }
 0x21a   :  { %p396_p0 = pnand %p395_p13, %p389_p10 }
 0x21c   :  { %399 = shalt.err (!%p396_p0)
}
 0x21d   :  { %s400_s5 = scalar_lea.hbm %s557_s3, 16 }
 0x21e   :  { %p401_p1 = scmp.ne.s32.totalorder %s557_s3, %s400_s5  ;;  %p404_p2 = scmp.lt.u32.totalorder %s400_s5, %s557_s3 }
 0x220   :  { %p406_p3 = pnand %p404_p2, %p401_p1 }
 0x222   :  { %409 = shalt.err (!%p406_p3)
}
 0x223   :  { %245 = dma.vmem_to_hbm [thread:$0]  %s243_s11, 16, %s557_s3, [#allocation4]  }
 0x224   :  { %412 = dma.done.wait [#allocation4], 16  }
 0x225   :  { %413 = vsyncadd [#allocation4], 4294967280 }
 0x226   :  { %414 = dma.done.wait [#allocation7], 32  }
 0x227   :  { %415 = vsyncadd [#allocation7], 4294967264 }
 0x228   :  { %275 = vsyncpa [#allocation3], 1 }
 0x229   :  { %276 = vsyncpa [#allocation4], 1 }
 0x22a   :  { %277 = vsyncpa [#allocation7], 1 }

</bundles_post_ra>
